<compile_context>
chip_gen: v7x
topology: tpu7x:2x2x1
jax: 0.10.0
libtpu: 0.0.40
codegen_flags: <defaults>
</compile_context>

<pallas_src>
import functools

import jax
import jax.numpy as jnp
from jax.experimental import pallas as pl
from jax.experimental.pallas import tpu as pltpu


def mha_kernel(*refs, num_heads, separate_q):
    # Refs (separate_q=True):  xq (Bt,Nq,D), xf (Bt,N,D), wqkv (D,3D), bqkv (1,3D),
    #                          wp (D,D), bp (1,D), o (Bt,Nq,D)
    # Refs (separate_q=False): xf doubles as xq (Nq == N).
    if separate_q:
        xq_ref, xf_ref, wqkv_ref, bqkv_ref, wp_ref, bp_ref, o_ref = refs
    else:
        xf_ref, wqkv_ref, bqkv_ref, wp_ref, bp_ref, o_ref = refs
        xq_ref = xf_ref

    Bt, Nq, D = xq_ref.shape
    N = xf_ref.shape[1]
    H = num_heads
    Dh = D // H
    cdt = xq_ref.dtype  # MXU operand dtype (bf16 in production); accumulation stays fp32

    wqkv = wqkv_ref[...]          # (D, 3D), columns already permuted to [Q heads | K heads | V heads]
    bqkv = bqkv_ref[...]          # (1, 3D)

    if separate_q:
        # Q projection only on the query tile; K/V projection on the full sequence.
        xq2 = xq_ref[...].reshape(Bt * Nq, D)
        xf2 = xf_ref[...].reshape(Bt * N, D)
        q2 = jnp.dot(xq2, wqkv[:, :D], preferred_element_type=jnp.float32) + bqkv[:, :D]
        kv2 = jnp.dot(xf2, wqkv[:, D:], preferred_element_type=jnp.float32) + bqkv[:, D:]
        q = q2.astype(cdt).reshape(Bt, Nq, D)
        kv = kv2.astype(cdt).reshape(Bt, N, 2 * D)
    else:
        # Fused QKV projection as one 2-D MXU matmul.
        x2 = xf_ref[...].reshape(Bt * N, D)
        qkv2 = jnp.dot(x2, wqkv, preferred_element_type=jnp.float32) + bqkv
        qkv = qkv2.astype(cdt).reshape(Bt, N, 3 * D)
        q = qkv[:, :, :D]
        kv = qkv[:, :, D:]

    ctx_heads = []
    for h in range(H):  # heads: static unrolled loop over contiguous lane slices
        qh = q[:, :, h * Dh:(h + 1) * Dh]                  # (Bt, Nq, Dh)
        kh = kv[:, :, h * Dh:(h + 1) * Dh]                 # (Bt, N,  Dh)
        vh = kv[:, :, D + h * Dh:D + (h + 1) * Dh]         # (Bt, N,  Dh)

        s = jnp.einsum('bqd,bkd->bqk', qh, kh,
                       preferred_element_type=jnp.float32)  # (Bt, Nq, N) fp32 scores
        m = jnp.max(s, axis=-1, keepdims=True)
        p = jnp.exp(s - m)
        denom = jnp.sum(p, axis=-1, keepdims=True)
        # Deferred normalization: normalize the small (Bt, Nq, Dh) context, not the N^2 tensor.
        # The post-softmax 1/sqrt(dim) scale is folded into wp on the host.
        # TODO(synk): nn.Dropout(p=0.0) is identity at inference; dropout not implemented.
        ctx_u = jnp.einsum('bqk,bkd->bqd', p.astype(cdt), vh,
                           preferred_element_type=jnp.float32)
        ctx_heads.append(ctx_u * pl.reciprocal(denom, approx=True))

    # One lane-contiguous context buffer, then a single (Bt*Nq, D) @ (D, D) projection.
    ctx = jnp.concatenate(ctx_heads, axis=-1).reshape(Bt * Nq, D)
    out = jnp.dot(ctx.astype(cdt), wp_ref[...],
                  preferred_element_type=jnp.float32) + bp_ref[...]
    o_ref[...] = out.reshape(Bt, Nq, D).astype(o_ref.dtype)


def _vmem_budget_bytes():
    """Generation-aware VMEM budget: ~3/4 of per-core VMEM (96 MiB on v5e/v6e, 48 MiB on v7x)."""
    try:
        cap = int(pltpu.get_tpu_info().vmem_capacity_bytes)
    except Exception:  # conservative fallback that is safe on all generations
        cap = 64 * 1024 * 1024
    return (cap * 3) // 4


def _plan_blocks(B, N, D, itemsize, budget):
    """Pick (block_b, nq_blocks).

    Footprint model includes the single-buffered resident weights, double-buffered x/out
    tiles, and the fp32 intermediates (qkv result, one head's scores/exp, context).
    Prefers plans with >= 2 grid steps (both v7x TensorCores busy), then the largest batch
    block (big matmul M), then the fewest query blocks (least K/V-projection recompute).
    """
    f32 = 4
    weights = (4 * D * D + 4 * D) * itemsize               # wqkv + wp + biases, single-buffered

    def usage(bt, nqb):
        nq = N // nqb
        io = 2 * bt * N * D * itemsize                     # full-sequence x tile, double-buffered
        io += 2 * bt * nq * D * itemsize                   # output tile, double-buffered
        if nqb > 1:
            io += 2 * bt * nq * D * itemsize               # query tile, double-buffered
        interm = 3 * bt * N * D * (f32 + itemsize)         # fp32 qkv result + compute-dtype copy
        interm += 2 * bt * nq * N * f32                    # one head's scores + exp
        interm += 2 * bt * nq * D * f32                    # concatenated context + fp32 proj result
        return weights + io + interm

    def nq_ok(nqb):
        # query-block row count must be a multiple of 8 (sublane constraint) unless it is N itself
        return N % nqb == 0 and (nqb == 1 or (N // nqb) % 8 == 0)

    feasible = [(bt, nqb)
                for bt in range(1, B + 1) if B % bt == 0
                for nqb in range(1, N + 1) if nq_ok(nqb) and usage(bt, nqb) <= budget]
    if not feasible:
        return 1, 1
    multi = [c for c in feasible if (B // c[0]) * c[1] >= 2]
    pool = multi if multi else feasible
    return max(pool, key=lambda c: (c[0], -c[1]))


def mha_forward(x, w_qkv, b_qkv, w_proj, b_proj, num_heads, block_b=None, nq_blocks=None):
    """x: (B, N, D); w_qkv: (3D, D); b_qkv: (3D,); w_proj: (D, D); b_proj: (D,)."""
    B, N, D = x.shape
    H = num_heads
    assert D % H == 0
    Dh = D // H

    # Host-side (one-time) parameter re-layout: fused QKV columns permuted to [Q | K | V]
    # with heads contiguous inside each (exactly the einops split, as pure layout plumbing),
    # and the post-softmax 1/sqrt(dim) scale folded into the projection weight:
    #   (softmax(s) @ v / sqrt(D)) @ Wp  ==  softmax(s) @ v @ (Wp / sqrt(D)).
    s = jnp.arange(3)[:, None, None]
    h = jnp.arange(H)[None, :, None]
    d = jnp.arange(Dh)[None, None, :]
    old_cols = ((h * Dh + d) * 3 + s).reshape(-1)          # new position (s, h, d) <- old column
    wqkv_t = w_qkv.T[:, old_cols]                          # (D, 3D)
    bqkv2 = b_qkv[old_cols][None, :]                       # (1, 3D)
    # TODO(synk): spec references self.embedding_dim which is never defined; interpreted as `dim`.
    inv_scale = 1.0 / (float(D) ** 0.5)
    wp_t = (w_proj.T * inv_scale).astype(w_proj.dtype)     # (D, D), scale pre-folded
    bp2 = b_proj[None, :]                                  # (1, D)

    itemsize = jnp.dtype(x.dtype).itemsize
    budget = _vmem_budget_bytes()
    auto_bb, auto_nq = _plan_blocks(B, N, D, itemsize, budget)
    if block_b is None:
        block_b = auto_bb
    if nq_blocks is None:
        nq_blocks = auto_nq
    assert B % block_b == 0 and N % nq_blocks == 0
    block_nq = N // nq_blocks
    separate_q = nq_blocks > 1

    grid = (B // block_b, nq_blocks)

    def weight_spec():
        # Single-buffered, fully VMEM-resident (no second copy held for pipelining).
        return pl.BlockSpec(memory_space=pltpu.MemorySpace.VMEM)

    x_full_spec = pl.BlockSpec((block_b, N, D), lambda i, j: (i, 0, 0))
    xq_spec = pl.BlockSpec((block_b, block_nq, D), lambda i, j: (i, j, 0))
    out_spec = pl.BlockSpec((block_b, block_nq, D), lambda i, j: (i, j, 0))

    if separate_q:
        in_specs = [xq_spec, x_full_spec,
                    weight_spec(), weight_spec(), weight_spec(), weight_spec()]
        operands = (x, x, wqkv_t, bqkv2, wp_t, bp2)
    else:
        in_specs = [x_full_spec,
                    weight_spec(), weight_spec(), weight_spec(), weight_spec()]
        operands = (x, wqkv_t, bqkv2, wp_t, bp2)

    kernel = functools.partial(mha_kernel, num_heads=H, separate_q=separate_q)

    cost = pl.CostEstimate(
        flops=int(2 * B * N * (4 * D * D + 2 * N * D)),
        transcendentals=int(B * H * N * N),
        bytes_accessed=int(2 * B * N * D * itemsize + 4 * D * D * itemsize),
    )

    return pl.pallas_call(
        kernel,
        out_shape=jax.ShapeDtypeStruct((B, N, D), x.dtype),
        grid_spec=pltpu.PrefetchScalarGridSpec(
            num_scalar_prefetch=0,
            grid=grid,
            in_specs=in_specs,
            out_specs=out_spec,
        ),
        compiler_params=pltpu.CompilerParams(
            dimension_semantics=("parallel", "parallel"),
            vmem_limit_bytes=int(budget),
        ),
        cost_estimate=cost,
    )(*operands)


def mha_reference(x, w_qkv, b_qkv, w_proj, b_proj, num_heads):
    """Pure-JAX replica of the PyTorch forward (including scale-after-softmax)."""
    B, N, D = x.shape
    H = num_heads
    Dh = D // H
    qkv = x @ w_qkv.T + b_qkv                              # (B, N, 3D)
    qkv = qkv.reshape(B, N, H, Dh, 3)                      # 'b n (h d qkv)'
    qkv = jnp.transpose(qkv, (4, 0, 2, 1, 3))              # '(qkv) b h n d'
    q, k, v = qkv[0], qkv[1], qkv[2]
    att = jnp.einsum('bhqd,bhkd->bhqk', q, k)
    att = jax.nn.softmax(att, axis=-1)
    att = att / (float(D) ** 0.5)
    out = jnp.einsum('bhqk,bhkd->bhqd', att, v)
    out = jnp.transpose(out, (0, 2, 1, 3)).reshape(B, N, D)  # 'b h a v -> b a (h v)'
    return out @ w_proj.T + b_proj


if __name__ == "__main__":
    B, N, D, H = 2, 8, 32, 4
    key = jax.random.PRNGKey(0)
    k1, k2, k3, k4, k5 = jax.random.split(key, 5)
    x = jax.random.normal(k1, (B, N, D), dtype=jnp.float32)
    w_qkv = jax.random.normal(k2, (3 * D, D), dtype=jnp.float32) * (1.0 / (D ** 0.5))
    b_qkv = jax.random.normal(k3, (3 * D,), dtype=jnp.float32) * 0.02
    w_proj = jax.random.normal(k4, (D, D), dtype=jnp.float32) * (1.0 / (D ** 0.5))
    b_proj = jax.random.normal(k5, (D,), dtype=jnp.float32) * 0.02

    out = mha_forward(x, w_qkv, b_qkv, w_proj, b_proj, num_heads=H)
    out = jax.block_until_ready(out)

    ref = mha_reference(x, w_qkv, b_qkv, w_proj, b_proj, num_heads=H)
    assert out.shape == (B, N, D)
    # Tolerance covers the EUP approximate reciprocal used for the deferred softmax normalization.
    err = float(jnp.max(jnp.abs(out - ref)))
    assert jnp.allclose(out, ref, atol=2e-2, rtol=2e-2), err
    print("KERNEL_OK")
</pallas_src>

<mosaic_0001>
module attributes {stable_mosaic.version = 11 : i64} {
  func.func @mha_kernel(%arg0: i32, %arg1: i32, %arg2: memref<1x8x32xf32, #tpu.memory_space<vmem>>, %arg3: memref<32x96xf32, #tpu.memory_space<vmem>>, %arg4: memref<1x96xf32, #tpu.memory_space<vmem>>, %arg5: memref<32x32xf32, #tpu.memory_space<vmem>>, %arg6: memref<1x32xf32, #tpu.memory_space<vmem>>, %arg7: memref<1x8x32xf32, #tpu.memory_space<vmem>>) attributes {dimension_semantics = [#tpu.dimension_semantics<parallel>, #tpu.dimension_semantics<parallel>], iteration_bounds = array<i64: 2, 1>, scalar_prefetch = 0 : i64, scratch_operands = 0 : i64, tpu.core_type = #tpu.core_type<tc>, window_params = [{transform_indices = @transform_0, window_bounds = array<i64: 1, 8, 32>}, {pipeline_mode = #tpu.pipeline_mode<synchronous>, transform_indices = @transform_1, window_bounds = array<i64: 32, 96>}, {pipeline_mode = #tpu.pipeline_mode<synchronous>, transform_indices = @transform_2, window_bounds = array<i64: 1, 96>}, {pipeline_mode = #tpu.pipeline_mode<synchronous>, transform_indices = @transform_3, window_bounds = array<i64: 32, 32>}, {pipeline_mode = #tpu.pipeline_mode<synchronous>, transform_indices = @transform_4, window_bounds = array<i64: 1, 32>}, {transform_indices = @transform_5, window_bounds = array<i64: 1, 8, 32>}]} {
    %c0 = arith.constant 0 : index
    %c0_0 = arith.constant 0 : index
    %0 = vector.load %arg3[%c0, %c0_0] : memref<32x96xf32, #tpu.memory_space<vmem>>, vector<32x96xf32>
    %c0_1 = arith.constant 0 : index
    %c0_2 = arith.constant 0 : index
    %1 = vector.load %arg4[%c0_1, %c0_2] : memref<1x96xf32, #tpu.memory_space<vmem>>, vector<1x96xf32>
    %c0_3 = arith.constant 0 : index
    %c0_4 = arith.constant 0 : index
    %c0_5 = arith.constant 0 : index
    %2 = vector.load %arg2[%c0_3, %c0_4, %c0_5] : memref<1x8x32xf32, #tpu.memory_space<vmem>>, vector<1x8x32xf32>
    %3 = vector.shape_cast %2 : vector<1x8x32xf32> to vector<8x32xf32>
    %cst = arith.constant dense<0.000000e+00> : vector<8x96xf32>
    %4 = tpu.matmul %3, %0, %cst {dimension_numbers = #tpu.dot_dimension_numbers<[1], [0], [0], [1], [0, 0, 1, 1], [], []>} : vector<8x32xf32>, vector<32x96xf32>, vector<8x96xf32> -> vector<8x96xf32>
    %5 = vector.broadcast %1 : vector<1x96xf32> to vector<8x96xf32>
    %6 = arith.addf %4, %5 : vector<8x96xf32>
    %7 = vector.shape_cast %6 : vector<8x96xf32> to vector<1x8x96xf32>
    %8 = vector.extract_strided_slice %7 {offsets = [0, 0, 0], sizes = [1, 8, 32], strides = [1, 1, 1]} : vector<1x8x96xf32> to vector<1x8x32xf32>
    %9 = vector.extract_strided_slice %7 {offsets = [0, 0, 32], sizes = [1, 8, 64], strides = [1, 1, 1]} : vector<1x8x96xf32> to vector<1x8x64xf32>
    %10 = vector.extract_strided_slice %8 {offsets = [0, 0, 0], sizes = [1, 8, 8], strides = [1, 1, 1]} : vector<1x8x32xf32> to vector<1x8x8xf32>
    %11 = vector.extract_strided_slice %9 {offsets = [0, 0, 0], sizes = [1, 8, 8], strides = [1, 1, 1]} : vector<1x8x64xf32> to vector<1x8x8xf32>
    %12 = vector.extract_strided_slice %9 {offsets = [0, 0, 32], sizes = [1, 8, 8], strides = [1, 1, 1]} : vector<1x8x64xf32> to vector<1x8x8xf32>
    "tpu.trace_start"() <{level = 10 : i32, message = "bqd,bkd->bqk"}> : () -> ()
    %cst_6 = arith.constant dense<0.000000e+00> : vector<1x8x8xf32>
    %13 = tpu.matmul %10, %11, %cst_6 {dimension_numbers = #tpu.dot_dimension_numbers<[2], [2], [1], [1], [0, 0, 0, 1, 1, 1], [0], [0]>} : vector<1x8x8xf32>, vector<1x8x8xf32>, vector<1x8x8xf32> -> vector<1x8x8xf32>
    "tpu.trace_stop"() : () -> ()
    %cst_7 = arith.constant dense<0xFF800000> : vector<1x8xf32>
    %14 = vector.multi_reduction <maximumf>, %13, %cst_7 [2] : vector<1x8x8xf32> to vector<1x8xf32>
    %15 = vector.shape_cast %14 : vector<1x8xf32> to vector<1x8x1xf32>
    %16 = vector.broadcast %15 : vector<1x8x1xf32> to vector<1x8x8xf32>
    %17 = arith.subf %13, %16 : vector<1x8x8xf32>
    %18 = math.exp %17 : vector<1x8x8xf32>
    %cst_8 = arith.constant dense<0.000000e+00> : vector<1x8xf32>
    %19 = vector.multi_reduction <add>, %18, %cst_8 [2] : vector<1x8x8xf32> to vector<1x8xf32>
    %20 = vector.shape_cast %19 : vector<1x8xf32> to vector<1x8x1xf32>
    "tpu.trace_start"() <{level = 10 : i32, message = "bqk,bkd->bqd"}> : () -> ()
    %cst_9 = arith.constant dense<0.000000e+00> : vector<1x8x8xf32>
    %21 = tpu.matmul %18, %12, %cst_9 {dimension_numbers = #tpu.dot_dimension_numbers<[2], [1], [1], [2], [0, 0, 0, 1, 1, 2], [0], [0]>} : vector<1x8x8xf32>, vector<1x8x8xf32>, vector<1x8x8xf32> -> vector<1x8x8xf32>
    "tpu.trace_stop"() : () -> ()
    %22 = tpu.reciprocal %20 {approx = true} : vector<1x8x1xf32> -> vector<1x8x1xf32>
    %23 = vector.broadcast %22 : vector<1x8x1xf32> to vector<1x8x8xf32>
    %24 = arith.mulf %21, %23 : vector<1x8x8xf32>
    %25 = vector.extract_strided_slice %8 {offsets = [0, 0, 8], sizes = [1, 8, 8], strides = [1, 1, 1]} : vector<1x8x32xf32> to vector<1x8x8xf32>
    %26 = vector.extract_strided_slice %9 {offsets = [0, 0, 8], sizes = [1, 8, 8], strides = [1, 1, 1]} : vector<1x8x64xf32> to vector<1x8x8xf32>
    %27 = vector.extract_strided_slice %9 {offsets = [0, 0, 40], sizes = [1, 8, 8], strides = [1, 1, 1]} : vector<1x8x64xf32> to vector<1x8x8xf32>
    "tpu.trace_start"() <{level = 10 : i32, message = "bqd,bkd->bqk"}> : () -> ()
    %cst_10 = arith.constant dense<0.000000e+00> : vector<1x8x8xf32>
    %28 = tpu.matmul %25, %26, %cst_10 {dimension_numbers = #tpu.dot_dimension_numbers<[2], [2], [1], [1], [0, 0, 0, 1, 1, 1], [0], [0]>} : vector<1x8x8xf32>, vector<1x8x8xf32>, vector<1x8x8xf32> -> vector<1x8x8xf32>
    "tpu.trace_stop"() : () -> ()
    %cst_11 = arith.constant dense<0xFF800000> : vector<1x8xf32>
    %29 = vector.multi_reduction <maximumf>, %28, %cst_11 [2] : vector<1x8x8xf32> to vector<1x8xf32>
    %30 = vector.shape_cast %29 : vector<1x8xf32> to vector<1x8x1xf32>
    %31 = vector.broadcast %30 : vector<1x8x1xf32> to vector<1x8x8xf32>
    %32 = arith.subf %28, %31 : vector<1x8x8xf32>
    %33 = math.exp %32 : vector<1x8x8xf32>
    %cst_12 = arith.constant dense<0.000000e+00> : vector<1x8xf32>
    %34 = vector.multi_reduction <add>, %33, %cst_12 [2] : vector<1x8x8xf32> to vector<1x8xf32>
    %35 = vector.shape_cast %34 : vector<1x8xf32> to vector<1x8x1xf32>
    "tpu.trace_start"() <{level = 10 : i32, message = "bqk,bkd->bqd"}> : () -> ()
    %cst_13 = arith.constant dense<0.000000e+00> : vector<1x8x8xf32>
    %36 = tpu.matmul %33, %27, %cst_13 {dimension_numbers = #tpu.dot_dimension_numbers<[2], [1], [1], [2], [0, 0, 0, 1, 1, 2], [0], [0]>} : vector<1x8x8xf32>, vector<1x8x8xf32>, vector<1x8x8xf32> -> vector<1x8x8xf32>
    "tpu.trace_stop"() : () -> ()
    %37 = tpu.reciprocal %35 {approx = true} : vector<1x8x1xf32> -> vector<1x8x1xf32>
    %38 = vector.broadcast %37 : vector<1x8x1xf32> to vector<1x8x8xf32>
    %39 = arith.mulf %36, %38 : vector<1x8x8xf32>
    %40 = vector.extract_strided_slice %8 {offsets = [0, 0, 16], sizes = [1, 8, 8], strides = [1, 1, 1]} : vector<1x8x32xf32> to vector<1x8x8xf32>
    %41 = vector.extract_strided_slice %9 {offsets = [0, 0, 16], sizes = [1, 8, 8], strides = [1, 1, 1]} : vector<1x8x64xf32> to vector<1x8x8xf32>
    %42 = vector.extract_strided_slice %9 {offsets = [0, 0, 48], sizes = [1, 8, 8], strides = [1, 1, 1]} : vector<1x8x64xf32> to vector<1x8x8xf32>
    "tpu.trace_start"() <{level = 10 : i32, message = "bqd,bkd->bqk"}> : () -> ()
    %cst_14 = arith.constant dense<0.000000e+00> : vector<1x8x8xf32>
    %43 = tpu.matmul %40, %41, %cst_14 {dimension_numbers = #tpu.dot_dimension_numbers<[2], [2], [1], [1], [0, 0, 0, 1, 1, 1], [0], [0]>} : vector<1x8x8xf32>, vector<1x8x8xf32>, vector<1x8x8xf32> -> vector<1x8x8xf32>
    "tpu.trace_stop"() : () -> ()
    %cst_15 = arith.constant dense<0xFF800000> : vector<1x8xf32>
    %44 = vector.multi_reduction <maximumf>, %43, %cst_15 [2] : vector<1x8x8xf32> to vector<1x8xf32>
    %45 = vector.shape_cast %44 : vector<1x8xf32> to vector<1x8x1xf32>
    %46 = vector.broadcast %45 : vector<1x8x1xf32> to vector<1x8x8xf32>
    %47 = arith.subf %43, %46 : vector<1x8x8xf32>
    %48 = math.exp %47 : vector<1x8x8xf32>
    %cst_16 = arith.constant dense<0.000000e+00> : vector<1x8xf32>
    %49 = vector.multi_reduction <add>, %48, %cst_16 [2] : vector<1x8x8xf32> to vector<1x8xf32>
    %50 = vector.shape_cast %49 : vector<1x8xf32> to vector<1x8x1xf32>
    "tpu.trace_start"() <{level = 10 : i32, message = "bqk,bkd->bqd"}> : () -> ()
    %cst_17 = arith.constant dense<0.000000e+00> : vector<1x8x8xf32>
    %51 = tpu.matmul %48, %42, %cst_17 {dimension_numbers = #tpu.dot_dimension_numbers<[2], [1], [1], [2], [0, 0, 0, 1, 1, 2], [0], [0]>} : vector<1x8x8xf32>, vector<1x8x8xf32>, vector<1x8x8xf32> -> vector<1x8x8xf32>
    "tpu.trace_stop"() : () -> ()
    %52 = tpu.reciprocal %50 {approx = true} : vector<1x8x1xf32> -> vector<1x8x1xf32>
    %53 = vector.broadcast %52 : vector<1x8x1xf32> to vector<1x8x8xf32>
    %54 = arith.mulf %51, %53 : vector<1x8x8xf32>
    %55 = vector.extract_strided_slice %8 {offsets = [0, 0, 24], sizes = [1, 8, 8], strides = [1, 1, 1]} : vector<1x8x32xf32> to vector<1x8x8xf32>
    %56 = vector.extract_strided_slice %9 {offsets = [0, 0, 24], sizes = [1, 8, 8], strides = [1, 1, 1]} : vector<1x8x64xf32> to vector<1x8x8xf32>
    %57 = vector.extract_strided_slice %9 {offsets = [0, 0, 56], sizes = [1, 8, 8], strides = [1, 1, 1]} : vector<1x8x64xf32> to vector<1x8x8xf32>
    "tpu.trace_start"() <{level = 10 : i32, message = "bqd,bkd->bqk"}> : () -> ()
    %cst_18 = arith.constant dense<0.000000e+00> : vector<1x8x8xf32>
    %58 = tpu.matmul %55, %56, %cst_18 {dimension_numbers = #tpu.dot_dimension_numbers<[2], [2], [1], [1], [0, 0, 0, 1, 1, 1], [0], [0]>} : vector<1x8x8xf32>, vector<1x8x8xf32>, vector<1x8x8xf32> -> vector<1x8x8xf32>
    "tpu.trace_stop"() : () -> ()
    %cst_19 = arith.constant dense<0xFF800000> : vector<1x8xf32>
    %59 = vector.multi_reduction <maximumf>, %58, %cst_19 [2] : vector<1x8x8xf32> to vector<1x8xf32>
    %60 = vector.shape_cast %59 : vector<1x8xf32> to vector<1x8x1xf32>
    %61 = vector.broadcast %60 : vector<1x8x1xf32> to vector<1x8x8xf32>
    %62 = arith.subf %58, %61 : vector<1x8x8xf32>
    %63 = math.exp %62 : vector<1x8x8xf32>
    %cst_20 = arith.constant dense<0.000000e+00> : vector<1x8xf32>
    %64 = vector.multi_reduction <add>, %63, %cst_20 [2] : vector<1x8x8xf32> to vector<1x8xf32>
    %65 = vector.shape_cast %64 : vector<1x8xf32> to vector<1x8x1xf32>
    "tpu.trace_start"() <{level = 10 : i32, message = "bqk,bkd->bqd"}> : () -> ()
    %cst_21 = arith.constant dense<0.000000e+00> : vector<1x8x8xf32>
    %66 = tpu.matmul %63, %57, %cst_21 {dimension_numbers = #tpu.dot_dimension_numbers<[2], [1], [1], [2], [0, 0, 0, 1, 1, 2], [0], [0]>} : vector<1x8x8xf32>, vector<1x8x8xf32>, vector<1x8x8xf32> -> vector<1x8x8xf32>
    "tpu.trace_stop"() : () -> ()
    %67 = tpu.reciprocal %65 {approx = true} : vector<1x8x1xf32> -> vector<1x8x1xf32>
    %68 = vector.broadcast %67 : vector<1x8x1xf32> to vector<1x8x8xf32>
    %69 = arith.mulf %66, %68 : vector<1x8x8xf32>
    %70 = tpu.concatenate %24, %39, %54, %69 in 2 : vector<1x8x8xf32>, vector<1x8x8xf32>, vector<1x8x8xf32>, vector<1x8x8xf32> -> vector<1x8x32xf32>
    %71 = vector.shape_cast %70 : vector<1x8x32xf32> to vector<8x32xf32>
    %c0_22 = arith.constant 0 : index
    %c0_23 = arith.constant 0 : index
    %72 = vector.load %arg5[%c0_22, %c0_23] : memref<32x32xf32, #tpu.memory_space<vmem>>, vector<32x32xf32>
    %cst_24 = arith.constant dense<0.000000e+00> : vector<8x32xf32>
    %73 = tpu.matmul %71, %72, %cst_24 {dimension_numbers = #tpu.dot_dimension_numbers<[1], [0], [0], [1], [0, 0, 1, 1], [], []>} : vector<8x32xf32>, vector<32x32xf32>, vector<8x32xf32> -> vector<8x32xf32>
    %c0_25 = arith.constant 0 : index
    %c0_26 = arith.constant 0 : index
    %74 = vector.load %arg6[%c0_25, %c0_26] : memref<1x32xf32, #tpu.memory_space<vmem>>, vector<1x32xf32>
    %75 = vector.broadcast %74 : vector<1x32xf32> to vector<8x32xf32>
    %76 = arith.addf %73, %75 : vector<8x32xf32>
    %77 = vector.shape_cast %76 : vector<8x32xf32> to vector<1x8x32xf32>
    %c0_27 = arith.constant 0 : index
    %c0_28 = arith.constant 0 : index
    %c0_29 = arith.constant 0 : index
    %78 = vector.load %arg7[%c0_27, %c0_28, %c0_29] : memref<1x8x32xf32, #tpu.memory_space<vmem>>, vector<1x8x32xf32>
    tpu.vector_store %arg7[%c0_27, %c0_28, %c0_29], %77 {strides = array<i32>} : memref<1x8x32xf32, #tpu.memory_space<vmem>>, vector<1x8x32xf32>,
    return
  }
  func.func @transform_0(%arg0: i32, %arg1: i32) -> (i32, i32, i32) {
    %c0_i32 = arith.constant 0 : i32
    %c0_i32_0 = arith.constant 0 : i32
    %c0_i32_1 = arith.constant 0 : i32
    return %arg0, %c0_i32, %c0_i32_0 : i32, i32, i32
  }
  func.func @transform_1(%arg0: i32, %arg1: i32) -> (i32, i32) {
    %c0_i32 = arith.constant 0 : i32
    %c0_i32_0 = arith.constant 0 : i32
    %c0_i32_1 = arith.constant 0 : i32
    return %c0_i32, %c0_i32_0 : i32, i32
  }
  func.func @transform_2(%arg0: i32, %arg1: i32) -> (i32, i32) {
    %c0_i32 = arith.constant 0 : i32
    %c0_i32_0 = arith.constant 0 : i32
    %c0_i32_1 = arith.constant 0 : i32
    return %c0_i32, %c0_i32_0 : i32, i32
  }
  func.func @transform_3(%arg0: i32, %arg1: i32) -> (i32, i32) {
    %c0_i32 = arith.constant 0 : i32
    %c0_i32_0 = arith.constant 0 : i32
    %c0_i32_1 = arith.constant 0 : i32
    return %c0_i32, %c0_i32_0 : i32, i32
  }
  func.func @transform_4(%arg0: i32, %arg1: i32) -> (i32, i32) {
    %c0_i32 = arith.constant 0 : i32
    %c0_i32_0 = arith.constant 0 : i32
    %c0_i32_1 = arith.constant 0 : i32
    return %c0_i32, %c0_i32_0 : i32, i32
  }
  func.func @transform_5(%arg0: i32, %arg1: i32) -> (i32, i32, i32) {
    %c0_i32 = arith.constant 0 : i32
    %c0_i32_0 = arith.constant 0 : i32
    return %arg0, %arg1, %c0_i32 : i32, i32, i32
  }
}

</mosaic_0001>

<bundles_post_ra>
// kernel: tpu_custom_call.1
= control target key start
LH: loop header
LB: loop body
LE: loop exit
PB: predicated region body
PF: predicated region fallthrough
CT: control target
= control target key end

     0   :  { %10 = vsyncpa [#allocation3], 0  ;;  %s2055_s0 = inlined_call_operand.hbm [shape: f32[2,8,32], index: 0, kind: input, shape index: {}]   ;;  %s2056_s1 = inlined_call_operand.hbm [shape: f32[32,96], index: 1, kind: input, shape index: {}]   ;;  %s2057_s2 = inlined_call_operand.vmem [shape: f32[1,96], index: 2, kind: input, shape index: {}]   ;;  %s2058_s3 = inlined_call_operand.hbm [shape: f32[32,32], index: 3, kind: input, shape index: {}]   ;;  %s2059_s4 = inlined_call_operand.vmem [shape: f32[1,32], index: 4, kind: input, shape index: {}]   ;;  %s2060_s5 = inlined_call_operand.hbm [shape: f32[2,8,32], index: 5, kind: output, shape index: {}]  }
   0x1   :  { %12 = vsyncpa [#allocation3 + $0x1], 0 }
   0x2   :  { %13 = vsyncpa [#allocation6], 0 }
   0x3   :  { %14 = vsyncpa [#allocation4], 0 }
   0x4   :  { %16 = vsyncpa [#allocation4 + $0x1], 0  ;;  %s1722_s18 = smov 0   ;;  %s1724_s19 = smov 0  }
   0x5   :  { %s1726_s20 = smov 0   ;;  %s1728_s21 = smov 0  }
   0x6   :  { %s1730_s22 = smov 0   ;;  %s1732_s23 = smov 0  }
   0x7 LB: > { %s1244_s24 = sadd.s32 4294967295, %s1667_s23   ;;  %s1245_s25 = sadd.s32 4294967294, %s1667_s23   ;;  %s1667_s23 = sphi %s1732_s23, %s22_s23   ;;  %s1663_s22 = sphi %s1730_s22, %s2082_s22   ;;  %s1659_s21 = sphi %s1728_s21, %s2081_s21   ;;  %s1655_s20 = sphi %s1726_s20, %s2080_s20   ;;  %s1651_s19 = sphi %s1724_s19, %s2079_s19   ;;  %s1647_s18 = sphi %s1722_s18, %s2078_s18  }
   0x8   : > { %p54_p0 = scmp.ne.s32.totalorder %s1651_s19, %s1647_s18  ;;  %p1756_p1 = scmp.eq.s32.totalorder %s1244_s24, 0 }
   0x9   : > { %p1760_p2 = scmp.eq.s32.totalorder %s1244_s24, 1  ;;  %p170_p3 = scmp.eq.s32.totalorder %s1245_s25, 1 }
   0xa   : > { %s2065_s26 = scalar_select %p1756_p1, 1, 0 }
   0xb   : > { %p1766_p4 = por %p1756_p1, %p54_p0  ;;  %p1246_p5 = scmp.ge.s32.totalorder %s1667_s23, 1 }
   0xc   : > { %p1771_p6 = por %p170_p3, %p54_p0  ;;  %p177_p7 = scmp.lt.s32.totalorder %s1667_s23, 3 }
   0xd   : > { %s2067_s28 = scalar_select %p1766_p4, 1, 0 }
   0xe   : > { %s2068_s29 = scalar_select %p1771_p6, 1, 0 }
   0xf   : > { %p1776_p8 = pnand %p1246_p5, %p177_p7  ;;  %s1669_s6 = smov [#allocation5]  }
  0x10   : > { %s189_s7 = sshll.u32 %s1669_s6, 4  ;;  %s1670_s9 = smov [#allocation7]   ;;  %s1780_s7 = int_to_ptr.vmem [resolvable:$true] %s189_s7 }
  0x11   : > { %p1389_p9 = pneg %p1776_p8  ;;  %s205_s10 = sshll.u32 %s1670_s9, 4  ;;  %s1791_s10 = int_to_ptr.vmem [resolvable:$true] %s205_s10 }
  0x12   : > { %s1495_s13 = scalar_lea.hbm %s2056_s1, 512 }
  0x13   : > { %p1787_p11 = pnand %p1389_p9, %p1756_p1  ;;  %p1496_p12 = scmp.ne.s32.totalorder %s2056_s1, %s1495_s13 }
  0x14   : > { %p1502_p5 = scmp.lt.u32.totalorder %s1495_s13, %s2056_s1 }
  0x15   : > { %p1497_p13 = pneg %p1787_p11 }
  0x17   : > { %p1498_p0 = pnand %p1497_p13, %p1496_p12 }
  0x19   : > { %p1499_p3 = pneg %p1498_p0 }
  0x1b   : > { %p1504_p7 = pnand %p1502_p5, %p1499_p3 }
  0x1d   : > { %1507 = shalt.err (!%p1504_p7)
}
  0x1e   : > { %s1508_s24 = scalar_lea.vmem %s1780_s7, 512  ;;  %p1516_p1 = scmp.lt.s32.totalorder %s1780_s7, %s1780_s7 }
  0x1f   : > { %p1509_p9 = scmp.ne.s32.totalorder %s1780_s7, %s1508_s24  ;;  %p1517_p12 = scmp.lt.s32.totalorder %s1508_s24, %s1508_s24 }
  0x21   : > { %p1511_p10 = pnand %p1509_p9, %p1497_p13  ;;  %p1518_p0 = por %p1517_p12, %p1516_p1 }
  0x23   : > { %p1512_p6 = pneg %p1511_p10 }
  0x25   : > { %p1519_p4 = pnand %p1518_p0, %p1512_p6 }
  0x27   : > { %1522 = shalt.err (!%p1519_p4)
}
  0x28   : > { %s1671_s25 = smov 128   ;;  %s1672_s6 = smov 8  }
  0x29   : > { %1392 = dma.hbm_to_vmem [thread:$0]  (!%p1787_p11), %s2056_s1, 512, %s1780_s7, [#allocation6], %s1671_s25, %s1671_s25, %s1672_s6  }
  0x2a   : > { %s1523_s14 = scalar_lea.hbm %s2058_s3, 512 }
  0x2b   : > { %p1524_p1 = scmp.ne.s32.totalorder %s2058_s3, %s1523_s14  ;;  %p1530_p10 = scmp.lt.u32.totalorder %s1523_s14, %s2058_s3 }
  0x2d   : > { %p1526_p4 = pnand %p1524_p1, %p1497_p13 }
  0x2f   : > { %p1527_p6 = pneg %p1526_p4 }
  0x31   : > { %p1532_p3 = pnand %p1530_p10, %p1527_p6 }
  0x33   : > { %1535 = shalt.err (!%p1532_p3)
}
  0x34   : > { %s1536_s7 = scalar_lea.vmem %s1791_s10, 512  ;;  %p1544_p12 = scmp.lt.s32.totalorder %s1791_s10, %s1791_s10 }
  0x35   : > { %p1537_p5 = scmp.ne.s32.totalorder %s1791_s10, %s1536_s7  ;;  %p1545_p0 = scmp.lt.s32.totalorder %s1536_s7, %s1536_s7 }
  0x37   : > { %p1539_p7 = pnand %p1537_p5, %p1497_p13  ;;  %p1546_p1 = por %p1545_p0, %p1544_p12 }
  0x39   : > { %p1540_p9 = pneg %p1539_p7 }
  0x3b   : > { %p1547_p4 = pnand %p1546_p1, %p1540_p9 }
  0x3d   : > { %1550 = shalt.err (!%p1547_p4)
}
  0x3e   : > { %1395 = dma.hbm_to_vmem [thread:$0]  (!%p1787_p11), %s2058_s3, 512, %s1791_s10, [#allocation6], %s1671_s25, %s1671_s25, %s1672_s6  }
  0x3f   : > { %s34_s12 = sadd.s32 1, %s1663_s22  ;;  %s41_s13 = sadd.s32 1, %s1655_s20 }
  0x40   : > { %p36_p13 = scmp.ge.s32.totalorder %s34_s12, 2  ;;  %p48_p6 = scmp.ne.s32.totalorder %s1655_s20, %s1651_s19 }
  0x41   : > { %p49_p10 = scmp.eq.s32.totalorder %s1667_s23, 0  ;;  %p1406_p3 = scmp.lt.s32.totalorder %s1667_s23, 2 }
  0x42   : > { %s2084_s12 = smov (%p36_p13, %s34_s12), 0  ;;  %p1855_p7 = por %p1760_p2, %p48_p6 }
  0x43   : > { %p50_p5 = por %p49_p10, %p48_p6  ;;  %s38_s14 = ssub.s32 %s1663_s22, %s2084_s12 }
  0x44   : > { %s2071_s8 = scalar_select %p1855_p7, 1, 0 }
  0x45   : > { %s222_s15 = sand.u32 1, %s1655_s20   ;;  %p39_p9 = scmp.eq.s32.totalorder %s38_s14, 0 }
  0x46   : > { %s1250_s10 = sshll.u32 %s222_s15, 3  ;;  %s1251_s25 = sshll.u32 %s1663_s22, 7 }
  0x47   : > { %s1864_s6 = scalar_select %p39_p9, %s1655_s20, %s41_s13  }
  0x48   : > { %s1869_s24 = scalar_lea.hbm %s2055_s0, %s1251_s25  ;;  %s226_s27 = scalar_lea.vmem [#allocation2], %s1250_s10 }
  0x49   : > { %s233_s7 = sshll.u32 %s226_s27, 4  ;;  %p1873_p2 = pnand %p1406_p3, %p50_p5  ;;  %s1877_s7 = int_to_ptr.vmem [resolvable:$true] %s233_s7 }
  0x4a   : > { %s223_s11 = scalar_lea.sflag [#allocation3], %s222_s15  ;;  %s1551_s13 = scalar_lea.hbm %s1869_s24, 128 }
  0x4b   : > { %p1552_p11 = scmp.ne.s32.totalorder %s1869_s24, %s1551_s13  ;;  %p1553_p12 = pneg %p1873_p2 }
  0x4c   : > { %s1556_s25 = scalar_lea.hbm %s2055_s0, 256  ;;  %p1557_p4 = scmp.lt.u32.totalorder %s1869_s24, %s2055_s0 }
  0x4d   : > { %p1554_p0 = pnand %p1553_p12, %p1552_p11  ;;  %p1558_p13 = scmp.lt.u32.totalorder %s1556_s25, %s1551_s13 }
  0x4e   : > { %p1560_p10 = scmp.lt.u32.totalorder %s1551_s13, %s1869_s24 }
  0x4f   : > { %p1555_p1 = pneg %p1554_p0  ;;  %p1559_p6 = por %p1558_p13, %p1557_p4 }
  0x51   : > { %p1561_p3 = por %p1560_p10, %p1559_p6 }
  0x53   : > { %p1562_p5 = pnand %p1561_p3, %p1555_p1 }
  0x55   : > { %1565 = shalt.err (!%p1562_p5)
}
  0x56   : > { %s1566_s15 = scalar_lea.vmem %s1877_s7, 128  ;;  %s1673_s27 = smov [#allocation2]  }
  0x57   : > { %p1567_p9 = scmp.ne.s32.totalorder %s1877_s7, %s1566_s15  ;;  %s1571_s14 = sshll.u32 %s1673_s27, 4  ;;  %s1572_s14 = int_to_ptr.vmem [resolvable:$false] %s1571_s14 }
  0x58   : > { %s1573_s10 = scalar_lea.vmem %s1572_s14, 256  ;;  %p1574_p7 = scmp.lt.s32.totalorder %s1877_s7, %s1572_s14 }
  0x59   : > { %p1569_p11 = pnand %p1567_p9, %p1553_p12  ;;  %p1575_p4 = scmp.lt.s32.totalorder %s1573_s10, %s1566_s15 }
  0x5b   : > { %p1570_p0 = pneg %p1569_p11  ;;  %p1576_p13 = por %p1575_p4, %p1574_p7 }
  0x5d   : > { %p1577_p6 = pnand %p1576_p13, %p1570_p0 }
  0x5f   : > { %1580 = shalt.err (!%p1577_p6)
}
  0x60   : > { %1399 = dma.hbm_to_vmem [thread:$0]  (!%p1873_p2), %s1869_s24, 128, %s1877_s7, %s223_s11  }
  0x61   : > { %242 = sbr.rel (%p1776_p8) target bundleno = 1761 (0x6e1), region = 40  ;;  %s1907_s13 = sand.u32 (!%p1776_p8), 1, %s1651_s19  }
  0x62   : > { %s1253_s25 = sshll.u32 (!%p1776_p8), %s1907_s13, 3  ;;  %s245_s16 = scalar_lea.sflag (!%p1776_p8), [#allocation3], %s1907_s13 }
  0x63   : > { %s248_s17 = scalar_lea.vmem (!%p1776_p8), [#allocation2], %s1253_s25  ;;  %p2073_p7 = scmp.ne.s32.totalorder (!%p1776_p8), %s2067_s28, 0 }
  0x68   : > { %1634 = dma.done.wait (%p2073_p7), %s245_s16, 128  }
  0x69   : > { %1636 = vsyncadd (%p2073_p7), %s245_s16, 4294967168  ;;  %p2074_p2 = scmp.ne.s32.totalorder %s2065_s26, 0 }
  0x6b   : > { %1638 = dma.done.wait (%p2074_p2), [#allocation6], 1024  }
  0x6c   : > { %1640 = vsyncadd (%p2074_p2), [#allocation6], 4294966272  ;;  %v1674_v0 = vmov 0.0|0.0   ;;  %vm1675_vm0 = vmmov 0   ;;  %v1676_v1 = vmov 0.0   ;;  %v283_v2 = vld [vmem:[#allocation5] sm:$0xff] }
  0x6d   : > { %1365 = vmatprep.subr.bf16.mxu0 %v1674_v0  ;;  %1311 = vmatprep.mubr.msk.f32.mxu0 %vm1675_vm0, %v1676_v1  ;;  %v284_v3 = vld [vmem:[#allocation5 + $0x8] sm:$0xff]  ;;  %v285_v4 = vld [vmem:[#allocation5 + $0x10] sm:$0xff]  ;;  %v286_v6 = vld [vmem:[#allocation5 + $0x18] sm:$0xff]  ;;  %vm295_vm1 = vcmask 261120   ;;  %s1677_s30 = smov 64   ;;  %s1678_s24 = smov 96  }
  0x6e   : > { %1314 = vmatprep.subr.mxu1 %v1676_v1  ;;  %1316 = vmatprep.mubr.msk.f32.mxu1 %vm1675_vm0, %v1676_v1  ;;  %v1366_v5 = vpack.c.bf16 %v284_v3, %v283_v2  ;;  %v1369_v7 = vpack.c.bf16 %v286_v6, %v285_v4  ;;  %v288_v8 = vld [vmem:[%s248_s17] sm:$0xff]  ;;  %s1679_s7 = smov 88   ;;  %s1680_s9 = smov 120   ;;  %vm372_vm2 = vcmask 64512   ;;  %v1046_v59 = vld [vmem:[#allocation7] sm:$0xff]  ;;  %v1047_v60 = vld [vmem:[#allocation7 + $0x8] sm:$0xff] }
  0x6f   : > { %v1257_v9 = vld [vmem:[%s2057_s2] ss:$0 sm:$0xff]  ;;  %s1681_s11 = smov 80   ;;  %s1682_s15 = smov 112   ;;  %v1372_v62 = vpack.c.bf16 %v1047_v60, %v1046_v59  ;;  %v1049_v2 = vld [vmem:[#allocation7 + $0x18] sm:$0xff]  ;;  %vm1042_vm3 = vcmask 130048  }
  0x70   : > { %1367 = vmatpush3.bf16.msra.mxu0 %v1366_v5  ;;  %s1683_s27 = smov 72   ;;  %s1684_s14 = smov 104   ;;  %v1048_v63 = vld [vmem:[#allocation7 + $0x10] sm:$0xff]  ;;  %vm1044_vm4 = vcmask 195584  }
  0x71   : > { %1368 = vmatprep.subr.bf16.mxu0 %v1674_v0  ;;  %s1685_s10 = smov 56   ;;  %s1686_s16 = smov 40   ;;  %v1375_v4 = vpack.c.bf16 %v1049_v2, %v1048_v63 }
  0x72   : > { %s1687_s17 = smov 48   ;;  %s1688_s26 = smov 8  }
  0x73   : > { %s1689_s28 = smov 16   ;;  %p2075_p12 = scmp.ne.s32.totalorder %s2071_s8, 0 }
  0x74   : > { %1370 = vmatpush3.bf16.msra.mxu0 %v1369_v7 }
  0x75   : > { %1334 = vmatprep.subr.mxu0 %v1676_v1 }
  0x77   : > { %1312 = vmatmul.mubr.msk.f32.vlgmr.msra.gmra.mrb[0].mxu0 %vm295_vm1, %v288_v8 }
  0x78   : > { %1336 = vmatprep.mubr.msk.f32.mxu0 %vm1675_vm0, %v1676_v1 }
 0x14a   : > { %v365_v10 = vpop.f32.mrb[0].mxu0 }
 0x14b   : > { %v1935_v11 = vadd.f32 %v1257_v9, %v365_v10  ;;  %v1313_v12 = vpop.f32.mrb[1].mxu0 }
 0x14d   : > { %456 = vrot.lane.b32.xlu1 %v1935_v11, %s1677_s30  ;;  %370 = vrot.lane.b32.xlu0 %v1935_v11, %s1678_s24  ;;  %s1690_s30 = smov 24  }
 0x151   : > { %536 = vrot.lane.b32.xlu1 %v1935_v11, %s1679_s7 }
 0x155   : > { %534 = vrot.lane.b32.xlu1 %v1935_v11, %s1680_s9  ;;  %s1274_s9 = sshll.u32 %s1659_s21, 7 }
 0x159   : > { %701 = vrot.lane.b32.xlu1 %v1935_v11, %s1681_s11  ;;  %s282_s11 = scalar_lea.vmem [#allocation8], %s1253_s25  ;;  %s1691_s25 = smov [#allocation8]  }
 0x15d   : > { %699 = vrot.lane.b32.xlu1 %v1935_v11, %s1682_s15  ;;  %s1146_s15 = sshll.u32 %s282_s11, 4  ;;  %s2007_s15 = int_to_ptr.vmem [resolvable:$true] %s1146_s15 }
 0x15e   : > { %s1581_s21 = scalar_lea.vmem %s2007_s15, 128 }
 0x15f   : > { %p1582_p8 = scmp.ne.s32.totalorder %s2007_s15, %s1581_s21 }
 0x161   : > { %866 = vrot.lane.b32.xlu1 %v1935_v11, %s1683_s27  ;;  %p1583_p1 = pnand %p1582_p8, %p2075_p12 }
 0x163   : > { %p1584_p10 = pneg %p1583_p1 }
 0x165   : > { %864 = vrot.lane.b32.xlu1 %v1935_v11, %s1684_s14 }
 0x1bf   : > { %v457_v13 = vpop.permute.xlu1 %456  ;;  %v371_v14 = vpop.permute.xlu0 %370 }
 0x1c0   : > { %1315 = vmatpush3.xpose.msk.msra.mxu1 %vm372_vm2, %v371_v14 }
 0x1c1   : > { %1319 = vmatprep.subr.mxu1 %v1676_v1 }
 0x1c3   : > { %v537_v15 = vpop.permute.xlu1 %536  ;;  %1317 = vmatmul.mubr.msk.f32.vlgmr.msra.gmra.mrb[0].mxu1 %vm372_vm2, %v1935_v11 }
 0x1c4   : > { %1320 = vmatpush3.msra.mxu1 %v457_v13  ;;  %1321 = vmatprep.mubr.msk.f32.mxu1 %vm1675_vm0, %v1676_v1 }
 0x1c5   : > { %1324 = vmatprep.subr.mxu1 %v1676_v1 }
 0x1c7   : > { %v535_v16 = vpop.permute.xlu1 %534 }
 0x1cb   : > { %v702_v17 = vpop.permute.xlu1 %701 }
 0x1cc   : > { %1335 = vmatpush3.xpose.msk.msra.mxu0 %vm372_vm2, %v702_v17 }
 0x1cd   : > { %1344 = vmatprep.subr.mxu0 %v1676_v1 }
 0x1cf   : > { %v700_v18 = vpop.permute.xlu1 %699 }
 0x1d0   : > { %1337 = vmatmul.mubr.msk.f32.vlgmr.msra.gmra.mrb[2].mxu0 %vm372_vm2, %v700_v18 }
 0x1d1   : > { %1346 = vmatprep.mubr.msk.f32.mxu0 %vm1675_vm0, %v1676_v1 }
 0x1d3   : > { %v867_v19 = vpop.permute.xlu1 %866 }
 0x1d4   : > { %1345 = vmatpush3.xpose.msk.msra.mxu0 %vm372_vm2, %v867_v19 }
 0x1d5   : > { %1371 = vmatprep.subr.bf16.mxu0 %v1674_v0 }
 0x1d7   : > { %v865_v20 = vpop.permute.xlu1 %864 }
 0x1d8   : > { %1347 = vmatmul.mubr.msk.f32.vlgmr.msra.gmra.mrb[4].mxu0 %vm372_vm2, %v865_v20 }
 0x1d9   : > { %1362 = vmatprep.mubr.msk.f32.mxu0 %vm1675_vm0, %v1676_v1  ;;  %1373 = vmatpush3.bf16.msra.mxu0 %v1372_v62 }
 0x1da   : > { %1374 = vmatprep.subr.bf16.mxu0 %v1674_v0 }
 0x1dd   : > { %1376 = vmatpush3.bf16.msra.mxu0 %v1375_v4 }
 0x296   : > { %v443_v21 = vpop.f32.mrb[0].mxu1 }
 0x297   : > { %v1318_v22 = vpop.f32.mrb[1].mxu1  ;;  %v447_v23 = vsel %vm372_vm2, %v443_v21, -inf }
 0x298   : > { %448 = vmax.xlane.f32.xlu0 %v447_v23 }
 0x2a3   : > { %v773_v24 = vpop.f32.mrb[2].mxu0 }
 0x2a4   : > { %v1338_v25 = vpop.f32.mrb[3].mxu0  ;;  %v777_v28 = vsel %vm372_vm2, %v773_v24, -inf }
 0x2ab   : > { %v938_v26 = vpop.f32.mrb[4].mxu0 }
 0x2ac   : > { %v1348_v27 = vpop.f32.mrb[5].mxu0  ;;  %v942_v29 = vsel %vm372_vm2, %v938_v26, -inf }
 0x2ae   : > { %621 = vrot.lane.b32.xlu0 %v1935_v11, %s1685_s10  ;;  %s2005_s10 = scalar_lea.hbm %s2060_s5, %s1274_s9 }
 0x2cd   : > { %778 = vmax.xlane.f32.xlu0 %v777_v28 }
 0x2d1   : > { %943 = vmax.xlane.f32.xlu0 %v942_v29 }
 0x2e7   : > { %951 = vrot.lane.b32.xlu0 %v1935_v11, %s1686_s16  ;;  %s1132_s16 = scalar_lea.sflag [#allocation4], %s1907_s13 }
 0x325   : > { %v449_v30 = vpop.xlane.xlu0 %448 }
 0x326   : > { %v450_v31 = vsub.f32 %v443_v21, %v449_v30 }
 0x328   : > { %v451_v32 = vmul.f32 1.442695, %v450_v31 }
 0x329   : > { %v622_v34 = vpop.permute.xlu0 %621 }
 0x32a   : > { %1479 = vpow2.f32 %v451_v32 }
 0x334   : > { %v1480_v33 = vpop.eup %1479 }
 0x335   : > { %1322 = vmatmul.mubr.msk.f32.vlgmr.msra.gmra.mrb[2].mxu1 %vm372_vm2, %v1480_v33  ;;  %v453_v57 = vsel %vm372_vm2, %v1480_v33, 0.0 }
 0x336   : > { %1325 = vmatpush3.xpose.msk.msra.mxu1 %vm372_vm2, %v537_v15  ;;  %1326 = vmatprep.mubr.msk.f32.mxu1 %vm1675_vm0, %v1676_v1 }
 0x337   : > { %1329 = vmatprep.subr.mxu1 %v1676_v1 }
 0x339   : > { %1327 = vmatmul.mubr.msk.f32.vlgmr.msra.gmra.mrb[4].mxu1 %vm372_vm2, %v535_v16 }
 0x33a   : > { %1330 = vmatpush3.msra.mxu1 %v622_v34  ;;  %1331 = vmatprep.mubr.msk.f32.mxu1 %vm1675_vm0, %v1676_v1 }
 0x33b   : > { %1339 = vmatprep.subr.mxu1 %v1676_v1 }
 0x35a   : > { %v779_v40 = vpop.xlane.xlu0 %778 }
 0x35b   : > { %v780_v41 = vsub.f32 %v773_v24, %v779_v40  ;;  %v1271_v24 = vld [vmem:[%s2059_s4] ss:$0 sm:$0xff] }
 0x35d   : > { %v781_v42 = vmul.f32 1.442695, %v780_v41 }
 0x35e   : > { %v944_v45 = vpop.xlane.xlu0 %943 }
 0x35f   : > { %1481 = vpow2.f32 %v781_v42  ;;  %v945_v46 = vsub.f32 %v938_v26, %v944_v45 }
 0x361   : > { %v946_v49 = vmul.f32 1.442695, %v945_v46 }
 0x362   : > { %v952_v55 = vpop.permute.xlu0 %951 }
 0x369   : > { %v1482_v43 = vpop.eup %1481 }
 0x36a   : > { %v783_v44 = vsel %vm372_vm2, %v1482_v43, 0.0 }
 0x408   : > { %v1976_v35 = vpop.f32.mrb[2].mxu1 }
 0x409   : > { %v1323_v36 = vpop.f32.mrb[3].mxu1 }
 0x40c   : > { %v608_v37 = vpop.f32.mrb[4].mxu1 }
 0x40d   : > { %v1328_v38 = vpop.f32.mrb[5].mxu1  ;;  %v612_v39 = vsel %vm372_vm2, %v608_v37, -inf }
 0x40e   : > { %613 = vmax.xlane.f32.xlu1 %v612_v39 }
 0x41f   : > { %786 = vrot.lane.b32.xlu1 %v1935_v11, %s1687_s17  ;;  %s1585_s17 = sshll.u32 %s1691_s25, 4  ;;  %s1586_s17 = int_to_ptr.vmem [resolvable:$false] %s1585_s17 }
 0x420   : > { %p1588_p3 = scmp.lt.s32.totalorder %s2007_s15, %s1586_s17 }
 0x443   : > { %784 = vadd.xlane.f32.xlu1 %v783_v44 }
 0x49b   : > { %v614_v47 = vpop.xlane.xlu1 %613 }
 0x49c   : > { %v615_v48 = vsub.f32 %v608_v37, %v614_v47 }
 0x49e   : > { %v616_v50 = vmul.f32 1.442695, %v615_v48 }
 0x49f   : > { %v787_v52 = vpop.permute.xlu1 %786 }
 0x4a0   : > { %1483 = vpow2.f32 %v616_v50 }
 0x4a1   : > { %1485 = vpow2.f32 %v946_v49 }
 0x4aa   : > { %v1484_v51 = vpop.eup %1483 }
 0x4ab   : > { %1332 = vmatmul.mubr.msk.f32.vlgmr.msra.gmra.mrb[6].mxu1 %vm372_vm2, %v1484_v51  ;;  %v618_v53 = vsel %vm372_vm2, %v1484_v51, 0.0  ;;  %v1486_v54 = vpop.eup %1485 }
 0x4ac   : > { %1340 = vmatpush3.msra.mxu1 %v787_v52  ;;  %619 = vadd.xlane.f32.xlu0 %v618_v53  ;;  %v948_v56 = vsel %vm372_vm2, %v1486_v54, 0.0 }
 0x4ad   : > { %1341 = vmatprep.mubr.msk.f32.mxu1 %vm1675_vm0, %v1676_v1  ;;  %1349 = vmatprep.subr.mxu1 %v1676_v1 }
 0x4af   : > { %1342 = vmatmul.mubr.msk.f32.vlgmr.msra.gmra.mrb[8].mxu1 %vm372_vm2, %v1482_v43 }
 0x4b0   : > { %1350 = vmatpush3.msra.mxu1 %v952_v55  ;;  %949 = vadd.xlane.f32.xlu0 %v948_v56 }
 0x4b1   : > { %1351 = vmatprep.mubr.msk.f32.mxu1 %vm1675_vm0, %v1676_v1 }
 0x4b3   : > { %1352 = vmatmul.mubr.msk.f32.vlgmr.msra.gmra.mrb[10].mxu1 %vm372_vm2, %v1486_v54 }
 0x4b4   : > { %454 = vadd.xlane.f32.xlu0 %v453_v57 }
 0x4d0   : > { %v785_v61 = vpop.xlane.xlu1 %784 }
 0x539   : > { %v620_v58 = vpop.xlane.xlu0 %619 }
 0x53a   : > { %1487 = vrcp.f32 %v620_v58 }
 0x53b   : > { %1489 = vrcp.f32 %v785_v61 }
 0x53d   : > { %v950_v3 = vpop.xlane.xlu0 %949 }
 0x53e   : > { %1491 = vrcp.f32 %v950_v3 }
 0x541   : > { %v455_v15 = vpop.xlane.xlu0 %454 }
 0x542   : > { %1493 = vrcp.f32 %v455_v15 }
 0x544   : > { %v1488_v1 = vpop.eup %1487 }
 0x545   : > { %v1490_v8 = vpop.eup %1489 }
 0x548   : > { %v1492_v12 = vpop.eup %1491 }
 0x54c   : > { %v1494_v16 = vpop.eup %1493 }
 0x54d   : > { %v533_v18 = vmul.f32 %v1494_v16, %v1976_v35 }
 0x57e   : > { %v693_v5 = vpop.f32.mrb[6].mxu1 }
 0x57f   : > { %v698_v6 = vmul.f32 %v1488_v1, %v693_v5  ;;  %v1333_v7 = vpop.f32.mrb[7].mxu1 }
 0x581   : > { %1030 = vrot.lane.b32.xlu0 %v698_v6, %s1688_s26  ;;  %s1587_s26 = scalar_lea.vmem %s1586_s17, 256 }
 0x582   : > { %v858_v9 = vpop.f32.mrb[8].mxu1  ;;  %p1589_p5 = scmp.lt.s32.totalorder %s1587_s26, %s1581_s21 }
 0x583   : > { %v863_v10 = vmul.f32 %v1490_v8, %v858_v9  ;;  %v1343_v11 = vpop.f32.mrb[9].mxu1 }
 0x584   : > { %p1590_p9 = por %p1589_p5, %p1588_p3 }
 0x585   : > { %1034 = vrot.lane.b32.xlu1 %v863_v10, %s1689_s28 }
 0x586   : > { %v1023_v0 = vpop.f32.mrb[10].mxu1  ;;  %p1591_p11 = pnand %p1590_p9, %p1584_p10 }
 0x587   : > { %v1028_v13 = vmul.f32 %v1492_v12, %v1023_v0  ;;  %v1353_v14 = vpop.f32.mrb[11].mxu1 }
 0x589   : > { %1038 = vrot.lane.b32.xlu0 %v1028_v13, %s1690_s30 }
 0x5f3   : > { %v1031_v17 = vpop.permute.xlu0 %1030 }
 0x5f4   : > { %v1041_v20 = vsel %vm372_vm2, %v533_v18, %v1031_v17 }
 0x5f7   : > { %v1035_v19 = vpop.permute.xlu1 %1034 }
 0x5f8   : > { %v1043_v21 = vsel %vm1042_vm3, %v1041_v20, %v1035_v19 }
 0x5fb   : > { %v1039_v22 = vpop.permute.xlu0 %1038 }
 0x5fc   : > { %v1045_v23 = vsel %vm1044_vm4, %v1043_v21, %v1039_v22 }
 0x5fd   : > { %1363 = vmatmul.mubr.msk.f32.vlgmr.msra.gmra.mrb[6].mxu0 %vm295_vm1, %v1045_v23 }
 0x6d0   : > { %v1126_v25 = vpop.f32.mrb[6].mxu0 }
 0x6d1   : > { %v1127_v26 = vadd.f32 %v1271_v24, %v1126_v25  ;;  %v1364_v27 = vpop.f32.mrb[7].mxu0 }
 0x6d3   : > { %1130 = vst.msk [vmem:[%s282_s11] sm:$0xff] %vm295_vm1, %v1127_v26 }
 0x6d4   : > { %1594 = shalt.err (!%p1591_p11)
}
 0x6d5   : > { %s1595_s13 = scalar_lea.hbm %s2005_s10, 128  ;;  %s1599_s24 = scalar_lea.hbm %s2060_s5, 256 }
 0x6d6   : > { %p1596_p0 = scmp.ne.s32.totalorder %s2005_s10, %s1595_s13  ;;  %p1600_p6 = scmp.lt.u32.totalorder %s2005_s10, %s2060_s5 }
 0x6d7   : > { %p1601_p7 = scmp.lt.u32.totalorder %s1599_s24, %s1595_s13  ;;  %p1603_p8 = scmp.lt.u32.totalorder %s1595_s13, %s2005_s10 }
 0x6d8   : > { %p1597_p4 = pnand %p1596_p0, %p2075_p12 }
 0x6d9   : > { %p1602_p2 = por %p1601_p7, %p1600_p6 }
 0x6da   : > { %p1598_p13 = pneg %p1597_p4 }
 0x6db   : > { %p1604_p1 = por %p1603_p8, %p1602_p2 }
 0x6dd   : > { %p1605_p10 = pnand %p1604_p1, %p1598_p13 }
 0x6df   : > { %1608 = shalt.err (!%p1605_p10)
}
 0x6e0   : > { %1387 = dma.vmem_to_hbm [thread:$0]  (%p2075_p12), %s2007_s15, 128, %s2005_s10, %s1132_s16  }
 0x6e1 PF: > { %s1158_s11 = sand.u32 1, %s1647_s18   ;;  %p2076_p3 = scmp.ne.s32.totalorder %s2068_s29, 0 }
 0x6e2   : > { %p2077_p5 = scmp.ge.s32.totalorder %s1667_s23, 2  ;;  %s1159_s27 = scalar_lea.sflag [#allocation4], %s1158_s11 }
 0x6e4   : > { %p1401_p9 = pnand %p2077_p5, %p2076_p3 }
 0x6e6   : > { %1642 = dma.done.wait (!%p1401_p9), %s1159_s27, 128  }
 0x6e7   : > { %1644 = vsyncadd (!%p1401_p9), %s1159_s27, 4294967168  ;;  %s22_s23 = sadd.s32 1, %s1667_s23   ;;  %s2078_s18 = smov %s1651_s19 }
 0x6e8   : > { %p19_p11 = scmp.ge.s32.totalorder %s22_s23, 4   ;;  %s2079_s19 = smov %s1655_s20 }
 0x6e9   : > { %s2080_s20 = smov %s1864_s6  ;;  %s2081_s21 = smov %s1663_s22 }
 0x6ea   : > { %s2082_s22 = smov %s2084_s12  ;;  %21 = sbr.rel (!%p19_p11) target bundleno = 7 (0x7), region = 93 }
 0x6f1   :  { %1164 = vsyncpa [#allocation3], 1 }
 0x6f2   :  { %1166 = vsyncpa [#allocation3 + $0x1], 1 }
 0x6f3   :  { %1167 = vsyncpa [#allocation6], 1 }
 0x6f4   :  { %1168 = vsyncpa [#allocation4], 1 }
 0x6f5   :  { %1170 = vsyncpa [#allocation4 + $0x1], 1 }

</bundles_post_ra>
